<compile_context>
chip_gen: v7x
topology: tpu7x:2x2x1
jax: 0.10.0
libtpu: 0.0.40
codegen_flags: <defaults>
</compile_context>

<pallas_src>
import functools

import numpy as np
import jax
import jax.numpy as jnp
from jax.experimental import pallas as pl
from jax.experimental.pallas import tpu as pltpu

KH = KW = 3     # kernel size
DIL = 2         # dilation
PAD = 2         # padding


def _conv_row_tile_kernel(x_ref, w_ref, b_ref, o_ref, *, R, WIN):
    # x_ref: (1, Hp, W*Cin)        height-padded, width-folded image (one batch elem)
    # w_ref: (KH, W*Cin, W*Cout)   banded (width-unrolled) weights
    # b_ref: (1, W*Cout)           width-replicated bias
    # o_ref: (1, R, W*Cout)        lane-dense output row tile
    wcout = o_ref.shape[2]
    r0 = pl.multiple_of(pl.program_id(1) * R, R)

    # One aligned dynamic load covering the R output rows plus the dilated halo.
    win = x_ref[0, pl.ds(r0, WIN), :]                     # (WIN, W*Cin)

    acc = jnp.zeros((R, wcout), jnp.float32)
    for kh in range(KH):                                   # 3 taps -> 3 matmuls
        rows = win[kh * DIL:kh * DIL + R, :]               # static slice (R, W*Cin)
        acc = acc + jnp.dot(rows, w_ref[kh],
                            preferred_element_type=jnp.float32)
    acc = acc + b_ref[...].astype(jnp.float32)
    o_ref[0] = acc.astype(o_ref.dtype)                     # unmasked lane-dense store


def _banded_weights(weight_oihw, W):
    """band[kh, v*Cin+ci, w*Cout+co] = weight[co, ci, kh, kw] with
    v = w + DIL*kw - PAD; entries falling outside [0, W) stay zero, which
    implements the width zero-padding for free."""
    Cout, Cin, _, _ = weight_oihw.shape
    sel = np.zeros((KW, W, W), np.float32)
    for kw in range(KW):
        for w in range(W):
            v = w + DIL * kw - PAD
            if 0 <= v < W:
                sel[kw, v, w] = 1.0
    band = jnp.einsum('kvw,oihk->hviwo', jnp.asarray(sel),
                      weight_oihw.astype(jnp.float32))
    return band.reshape(KH, W * Cin, W * Cout)


def csdn_temd_forward(x_nchw, weight_oihw, bias, *, row_tile=8):
    """Forward pass of nn.Conv2d(in_ch, out_ch, 3, stride=1, padding=2, dilation=2)."""
    N, Cin, H, W = x_nchw.shape
    Cout = weight_oihw.shape[0]

    R = H if H < row_tile else row_tile                    # output rows per grid step
    assert H % R == 0, "H must be a multiple of the row tile"
    WIN = R + 8                                            # R rows + dilated halo, 8-aligned
    Hp = H + (WIN - R)                                     # allocated (padded) height

    # Layout fold + height-only zero pad (width padding is inside the banded weights).
    x_fold = jnp.transpose(x_nchw, (0, 2, 3, 1)).reshape(N, H, W * Cin)
    x_fold = jnp.pad(x_fold, ((0, 0), (PAD, Hp - H - PAD), (0, 0)))

    w_band = _banded_weights(weight_oihw, W).astype(x_nchw.dtype)      # (3, W*Cin, W*Cout)
    b_fold = jnp.tile(bias, W).reshape(1, W * Cout).astype(x_nchw.dtype)

    kernel = functools.partial(_conv_row_tile_kernel, R=R, WIN=WIN)

    out_fold = pl.pallas_call(
        kernel,
        out_shape=jax.ShapeDtypeStruct((N, H, W * Cout), x_nchw.dtype),
        grid_spec=pltpu.PrefetchScalarGridSpec(
            num_scalar_prefetch=0,
            grid=(N, H // R),
            in_specs=[
                # Whole (tiny) padded image per batch; block index constant in r,
                # so it is DMA'd once per batch and revisited across row tiles.
                pl.BlockSpec((1, Hp, W * Cin), lambda n, r: (n, 0, 0)),
                pl.BlockSpec((KH, W * Cin, W * Cout), lambda n, r: (0, 0, 0)),
                pl.BlockSpec((1, W * Cout), lambda n, r: (0, 0)),
            ],
            out_specs=pl.BlockSpec((1, R, W * Cout), lambda n, r: (n, r, 0)),
        ),
        compiler_params=pltpu.CompilerParams(
            dimension_semantics=("parallel", "parallel"),
            vmem_limit_bytes=32 * 1024 * 1024),
    )(x_fold, w_band, b_fold)

    # TODO(synk): in a production NHWC pipeline these layout transposes disappear.
    out = out_fold.reshape(N, H, W, Cout)
    return jnp.transpose(out, (0, 3, 1, 2))                # back to NCHW


if __name__ == "__main__":
    in_ch, out_ch = 4, 8
    N, H, W = 2, 16, 16

    key = jax.random.PRNGKey(0)
    kx, kw_, kb = jax.random.split(key, 3)

    x = jax.random.normal(kx, (N, in_ch, H, W), dtype=jnp.float32)

    # PyTorch Conv2d default init: U(-1/sqrt(fan_in), 1/sqrt(fan_in)), fan_in = in_ch*3*3.
    fan_in = in_ch * KH * KW
    bound = 1.0 / (fan_in ** 0.5)
    weight = jax.random.uniform(kw_, (out_ch, in_ch, KH, KW),
                                minval=-bound, maxval=bound, dtype=jnp.float32)
    bias = jax.random.uniform(kb, (out_ch,),
                              minval=-bound, maxval=bound, dtype=jnp.float32)

    out = jax.jit(csdn_temd_forward)(x, weight, bias)
    out = jax.block_until_ready(out)

    # Reference (pure XLA) correctness check.
    ref = jax.lax.conv_general_dilated(
        x, weight,
        window_strides=(1, 1),
        padding=((PAD, PAD), (PAD, PAD)),
        rhs_dilation=(DIL, DIL),
        dimension_numbers=("NCHW", "OIHW", "NCHW"),
    ) + bias.reshape(1, out_ch, 1, 1)

    assert out.shape == (N, out_ch, H, W), out.shape
    assert jnp.allclose(out, ref, atol=1e-4, rtol=1e-4), (
        float(jnp.max(jnp.abs(out - ref))))

    print("KERNEL_OK")
</pallas_src>

<mosaic_0001>
module attributes {stable_mosaic.version = 11 : i64} {
  func.func @_conv_row_tile_kernel(%arg0: i32, %arg1: i32, %arg2: memref<1x24x64xf32, #tpu.memory_space<vmem>>, %arg3: memref<3x64x128xf32, #tpu.memory_space<vmem>>, %arg4: memref<1x128xf32, #tpu.memory_space<vmem>>, %arg5: memref<1x8x128xf32, #tpu.memory_space<vmem>>) attributes {dimension_semantics = [#tpu.dimension_semantics<parallel>, #tpu.dimension_semantics<parallel>], iteration_bounds = array<i64: 2, 2>, scalar_prefetch = 0 : i64, scratch_operands = 0 : i64, tpu.core_type = #tpu.core_type<tc>, window_params = [{transform_indices = @transform_0, window_bounds = array<i64: 1, 24, 64>}, {pipeline_mode = #tpu.pipeline_mode<synchronous>, transform_indices = @transform_1, window_bounds = array<i64: 3, 64, 128>}, {pipeline_mode = #tpu.pipeline_mode<synchronous>, transform_indices = @transform_2, window_bounds = array<i64: 1, 128>}, {transform_indices = @transform_3, window_bounds = array<i64: 1, 8, 128>}]} {
    %c8_i32 = arith.constant 8 : i32
    %0 = arith.muli %arg1, %c8_i32 : i32
    %1 = tpu.assume_multiple %0, 8 : i32
    %c0 = arith.constant 0 : index
    %2 = arith.index_cast %1 : i32 to index
    %c0_0 = arith.constant 0 : index
    %3 = vector.load %arg2[%c0, %2, %c0_0] : memref<1x24x64xf32, #tpu.memory_space<vmem>>, vector<1x16x64xf32>
    %4 = vector.shape_cast %3 : vector<1x16x64xf32> to vector<16x64xf32>
    %cst = arith.constant 0.000000e+00 : f32
    %5 = vector.broadcast %cst : f32 to vector<8x128xf32>
    %6 = vector.extract_strided_slice %4 {offsets = [0, 0], sizes = [8, 64], strides = [1, 1]} : vector<16x64xf32> to vector<8x64xf32>
    %c0_1 = arith.constant 0 : index
    %c0_2 = arith.constant 0 : index
    %c0_3 = arith.constant 0 : index
    %7 = vector.load %arg3[%c0_1, %c0_2, %c0_3] : memref<3x64x128xf32, #tpu.memory_space<vmem>>, vector<1x64x128xf32>
    %8 = vector.shape_cast %7 : vector<1x64x128xf32> to vector<64x128xf32>
    %cst_4 = arith.constant dense<0.000000e+00> : vector<8x128xf32>
    %9 = tpu.matmul %6, %8, %cst_4 {dimension_numbers = #tpu.dot_dimension_numbers<[1], [0], [0], [1], [0, 0, 1, 1], [], []>} : vector<8x64xf32>, vector<64x128xf32>, vector<8x128xf32> -> vector<8x128xf32>
    %10 = arith.addf %5, %9 : vector<8x128xf32>
    %11 = vector.extract_strided_slice %4 {offsets = [2, 0], sizes = [8, 64], strides = [1, 1]} : vector<16x64xf32> to vector<8x64xf32>
    %c1 = arith.constant 1 : index
    %c0_5 = arith.constant 0 : index
    %c0_6 = arith.constant 0 : index
    %12 = vector.load %arg3[%c1, %c0_5, %c0_6] : memref<3x64x128xf32, #tpu.memory_space<vmem>>, vector<1x64x128xf32>
    %13 = vector.shape_cast %12 : vector<1x64x128xf32> to vector<64x128xf32>
    %cst_7 = arith.constant dense<0.000000e+00> : vector<8x128xf32>
    %14 = tpu.matmul %11, %13, %cst_7 {dimension_numbers = #tpu.dot_dimension_numbers<[1], [0], [0], [1], [0, 0, 1, 1], [], []>} : vector<8x64xf32>, vector<64x128xf32>, vector<8x128xf32> -> vector<8x128xf32>
    %15 = arith.addf %10, %14 : vector<8x128xf32>
    %16 = vector.extract_strided_slice %4 {offsets = [4, 0], sizes = [8, 64], strides = [1, 1]} : vector<16x64xf32> to vector<8x64xf32>
    %c2 = arith.constant 2 : index
    %c0_8 = arith.constant 0 : index
    %c0_9 = arith.constant 0 : index
    %17 = vector.load %arg3[%c2, %c0_8, %c0_9] : memref<3x64x128xf32, #tpu.memory_space<vmem>>, vector<1x64x128xf32>
    %18 = vector.shape_cast %17 : vector<1x64x128xf32> to vector<64x128xf32>
    %cst_10 = arith.constant dense<0.000000e+00> : vector<8x128xf32>
    %19 = tpu.matmul %16, %18, %cst_10 {dimension_numbers = #tpu.dot_dimension_numbers<[1], [0], [0], [1], [0, 0, 1, 1], [], []>} : vector<8x64xf32>, vector<64x128xf32>, vector<8x128xf32> -> vector<8x128xf32>
    %20 = arith.addf %15, %19 : vector<8x128xf32>
    %c0_11 = arith.constant 0 : index
    %c0_12 = arith.constant 0 : index
    %21 = vector.load %arg4[%c0_11, %c0_12] : memref<1x128xf32, #tpu.memory_space<vmem>>, vector<1x128xf32>
    %22 = vector.broadcast %21 : vector<1x128xf32> to vector<8x128xf32>
    %23 = arith.addf %20, %22 : vector<8x128xf32>
    %c0_13 = arith.constant 0 : index
    %c0_14 = arith.constant 0 : index
    %c0_15 = arith.constant 0 : index
    %24 = vector.load %arg5[%c0_13, %c0_14, %c0_15] : memref<1x8x128xf32, #tpu.memory_space<vmem>>, vector<1x8x128xf32>
    %25 = vector.shape_cast %24 : vector<1x8x128xf32> to vector<8x128xf32>
    %26 = vector.shape_cast %23 : vector<8x128xf32> to vector<1x8x128xf32>
    tpu.vector_store %arg5[%c0_13, %c0_14, %c0_15], %26 {strides = array<i32>} : memref<1x8x128xf32, #tpu.memory_space<vmem>>, vector<1x8x128xf32>,
    return
  }
  func.func @transform_0(%arg0: i32, %arg1: i32) -> (i32, i32, i32) {
    %c0_i32 = arith.constant 0 : i32
    %c0_i32_0 = arith.constant 0 : i32
    %c0_i32_1 = arith.constant 0 : i32
    return %arg0, %c0_i32, %c0_i32_0 : i32, i32, i32
  }
  func.func @transform_1(%arg0: i32, %arg1: i32) -> (i32, i32, i32) {
    %c0_i32 = arith.constant 0 : i32
    %c0_i32_0 = arith.constant 0 : i32
    %c0_i32_1 = arith.constant 0 : i32
    %c0_i32_2 = arith.constant 0 : i32
    return %c0_i32, %c0_i32_0, %c0_i32_1 : i32, i32, i32
  }
  func.func @transform_2(%arg0: i32, %arg1: i32) -> (i32, i32) {
    %c0_i32 = arith.constant 0 : i32
    %c0_i32_0 = arith.constant 0 : i32
    %c0_i32_1 = arith.constant 0 : i32
    return %c0_i32, %c0_i32_0 : i32, i32
  }
  func.func @transform_3(%arg0: i32, %arg1: i32) -> (i32, i32, i32) {
    %c0_i32 = arith.constant 0 : i32
    %c0_i32_0 = arith.constant 0 : i32
    return %arg0, %arg1, %c0_i32 : i32, i32, i32
  }
}

</mosaic_0001>

<bundles_post_ra>
// kernel: tile.8
= control target key start
LH: loop header
LB: loop body
LE: loop exit
PB: predicated region body
PF: predicated region fallthrough
CT: control target
= control target key end

     0   :  { %s28_s0 = inlined_call_operand.vmem [shape: f32[8], index: 0, kind: input, shape index: {}]   ;;  %s29_s1 = inlined_call_operand.vmem [shape: f32[16,8], index: 1, kind: output, shape index: {}]  }
   0x1   :  { %v4_v0 = vld [vmem:[%s28_s0] ss:$0 sm:$0xff] }
   0x2   :  { %5 = vst [vmem:[%s29_s1] sm:$0xff] %v4_v0  ;;  %8 = vst [vmem:[%s29_s1 + $0x8] sm:$0xff] %v4_v0 }

// kernel: tile.9
= control target key start
LH: loop header
LB: loop body
LE: loop exit
PB: predicated region body
PF: predicated region fallthrough
CT: control target
= control target key end

     0   :  { %s131_s10 = smov 120   ;;  %s132_s11 = smov 104   ;;  %vm3_vm0 = vcmask 64512   ;;  %vm9_vm1 = vcmask 1048512   ;;  %vm15_vm2 = vcmask 982912   ;;  %vm21_vm3 = vcmask 917312   ;;  %s207_s0 = inlined_call_operand.vmem [shape: f32[16,8], index: 0, kind: input, shape index: {}]   ;;  %s208_s1 = inlined_call_operand.vmem [shape: f32[1,128], index: 1, kind: output, shape index: {}]  }
   0x1   :  { %v101_v0 = vld [vmem:[%s207_s0 + $0xf] sm:$0x1]   ;;  %v103_v1 = vld [vmem:[%s207_s0 + $0xd] sm:$0x1]   ;;  %v102_v2 = vld [vmem:[%s207_s0 + $0xe] sm:$0x1]  }
   0x2   :  { %7 = vrot.lane.b32.xlu0 %v101_v0, %s131_s10  ;;  %19 = vrot.lane.b32.xlu1 %v103_v1, %s132_s11  ;;  %v104_v3 = vld [vmem:[%s207_s0 + $0xc] sm:$0x1]   ;;  %s133_s16 = smov 112   ;;  %s134_s17 = smov 96   ;;  %v105_v4 = vld [vmem:[%s207_s0 + $0xb] sm:$0x1]  }
   0x3   :  { %v106_v5 = vld [vmem:[%s207_s0 + $0xa] sm:$0x1]   ;;  %v2_v6 = vld [vmem:[%s207_s0] sm:$0x1]   ;;  %s135_s24 = smov 88   ;;  %s136_s25 = smov 80  }
   0x4   :  { %4 = vst.msk [vmem:[#allocation0] sm:$0x1] %vm3_vm0, %v2_v6   ;;  %v107_v7 = vld [vmem:[%s207_s0 + $0x9] sm:$0x1]   ;;  %v108_v8 = vld [vmem:[%s207_s0 + $0x8] sm:$0x1]  }
   0x5   :  { %s137_s30 = smov 72   ;;  %s138_s2 = smov 64   ;;  %v109_v9 = vld [vmem:[%s207_s0 + $0x7] sm:$0x1]   ;;  %v110_v10 = vld [vmem:[%s207_s0 + $0x6] sm:$0x1]  }
   0x6   :  { %13 = vrot.lane.b32.xlu0 %v102_v2, %s133_s16  ;;  %25 = vrot.lane.b32.xlu1 %v104_v3, %s134_s17  ;;  %s139_s7 = smov 56   ;;  %s140_s8 = smov 48   ;;  %v111_v11 = vld [vmem:[%s207_s0 + $0x5] sm:$0x1]   ;;  %v112_v12 = vld [vmem:[%s207_s0 + $0x4] sm:$0x1]  }
   0x7   :  { %s141_s13 = smov 40   ;;  %s142_s14 = smov 32   ;;  %v113_v13 = vld [vmem:[%s207_s0 + $0x3] sm:$0x1]   ;;  %v114_v14 = vld [vmem:[%s207_s0 + $0x2] sm:$0x1]  }
   0x8   :  { %s143_s19 = smov 24   ;;  %s144_s20 = smov 16   ;;  %v115_v15 = vld [vmem:[%s207_s0 + $0x1] sm:$0x1]   ;;  %vm27_vm4 = vcmask 851712   ;;  %vm33_vm5 = vcmask 786112  }
   0x9   :  { %s145_s0 = smov 8   ;;  %vm39_vm6 = vcmask 720512   ;;  %vm45_vm7 = vcmask 654912   ;;  %vm51_vm8 = vcmask 589312   ;;  %vm57_vm9 = vcmask 523712  }
   0xa   :  { %31 = vrot.lane.b32.xlu0 %v105_v4, %s135_s24  ;;  %37 = vrot.lane.b32.xlu1 %v106_v5, %s136_s25  ;;  %vm63_vm10 = vcmask 458112   ;;  %vm69_vm11 = vcmask 392512   ;;  %vm75_vm12 = vcmask 326912   ;;  %vm81_vm13 = vcmask 261312  }
   0xb   :  { %vm87_vm14 = vcmask 195712   ;;  %vm93_vm15 = vcmask 130112  }
   0xe   :  { %43 = vrot.lane.b32.xlu0 %v107_v7, %s137_s30  ;;  %49 = vrot.lane.b32.xlu1 %v108_v8, %s138_s2 }
  0x12   :  { %55 = vrot.lane.b32.xlu0 %v109_v9, %s139_s7  ;;  %61 = vrot.lane.b32.xlu1 %v110_v10, %s140_s8 }
  0x16   :  { %67 = vrot.lane.b32.xlu0 %v111_v11, %s141_s13  ;;  %73 = vrot.lane.b32.xlu1 %v112_v12, %s142_s14 }
  0x1a   :  { %79 = vrot.lane.b32.xlu0 %v113_v13, %s143_s19  ;;  %85 = vrot.lane.b32.xlu1 %v114_v14, %s144_s20 }
  0x1e   :  { %91 = vrot.lane.b32.xlu0 %v115_v15, %s145_s0 }
  0x74   :  { %v8_v16 = vpop.permute.xlu0 %7   ;;  %v20_v17 = vpop.permute.xlu1 %19  }
  0x75   :  { %10 = vst.msk [vmem:[#allocation0] sm:$0x1] %vm9_vm1, %v8_v16  }
  0x78   :  { %v14_v18 = vpop.permute.xlu0 %13   ;;  %v26_v19 = vpop.permute.xlu1 %25  }
  0x79   :  { %16 = vst.msk [vmem:[#allocation0] sm:$0x1] %vm15_vm2, %v14_v18  }
  0x7a   :  { %22 = vst.msk [vmem:[#allocation0] sm:$0x1] %vm21_vm3, %v20_v17  }
  0x7b   :  { %28 = vst.msk [vmem:[#allocation0] sm:$0x1] %vm27_vm4, %v26_v19  }
  0x7c   :  { %v32_v20 = vpop.permute.xlu0 %31   ;;  %v38_v21 = vpop.permute.xlu1 %37  }
  0x7d   :  { %34 = vst.msk [vmem:[#allocation0] sm:$0x1] %vm33_vm5, %v32_v20  }
  0x7e   :  { %40 = vst.msk [vmem:[#allocation0] sm:$0x1] %vm39_vm6, %v38_v21  }
  0x80   :  { %v44_v22 = vpop.permute.xlu0 %43   ;;  %v50_v23 = vpop.permute.xlu1 %49  }
  0x81   :  { %46 = vst.msk [vmem:[#allocation0] sm:$0x1] %vm45_vm7, %v44_v22  }
  0x82   :  { %52 = vst.msk [vmem:[#allocation0] sm:$0x1] %vm51_vm8, %v50_v23  }
  0x84   :  { %v56_v24 = vpop.permute.xlu0 %55   ;;  %v62_v25 = vpop.permute.xlu1 %61  }
  0x85   :  { %58 = vst.msk [vmem:[#allocation0] sm:$0x1] %vm57_vm9, %v56_v24  }
  0x86   :  { %64 = vst.msk [vmem:[#allocation0] sm:$0x1] %vm63_vm10, %v62_v25  }
  0x88   :  { %v68_v26 = vpop.permute.xlu0 %67   ;;  %v74_v27 = vpop.permute.xlu1 %73  }
  0x89   :  { %70 = vst.msk [vmem:[#allocation0] sm:$0x1] %vm69_vm11, %v68_v26  }
  0x8a   :  { %76 = vst.msk [vmem:[#allocation0] sm:$0x1] %vm75_vm12, %v74_v27  }
  0x8c   :  { %v80_v28 = vpop.permute.xlu0 %79   ;;  %v86_v29 = vpop.permute.xlu1 %85  }
  0x8d   :  { %82 = vst.msk [vmem:[#allocation0] sm:$0x1] %vm81_vm13, %v80_v28  }
  0x8e   :  { %88 = vst.msk [vmem:[#allocation0] sm:$0x1] %vm87_vm14, %v86_v29  }
  0x90   :  { %v92_v30 = vpop.permute.xlu0 %91  }
  0x91   :  { %94 = vst.msk [vmem:[#allocation0] sm:$0x1] %vm93_vm15, %v92_v30  }
  0x98   :  { %v98_v31 = vld [vmem:[#allocation0] sm:$0x1] }
  0x99   :  { %100 = vst [vmem:[%s208_s1] sm:$0x1] %v98_v31 }

// kernel: csdn_temd_forward.1
= control target key start
LH: loop header
LB: loop body
LE: loop exit
PB: predicated region body
PF: predicated region fallthrough
CT: control target
= control target key end

     0   :  { %s798_s12 = smov 0   ;;  %s800_s13 = smov 0   ;;  %s955_s0 = inlined_call_operand.vmem [shape: f32[2,24,64], index: 0, kind: input, shape index: {}]   ;;  %s956_s1 = inlined_call_operand.vmem [shape: f32[3,64,128], index: 1, kind: input, shape index: {}]   ;;  %s957_s2 = inlined_call_operand.vmem [shape: f32[1,128], index: 2, kind: input, shape index: {}]   ;;  %s958_s3 = inlined_call_operand.vmem [shape: f32[2,16,128], index: 3, kind: output, shape index: {}]  }
   0x1   :  { %s802_s14 = smov 0   ;;  %s804_s15 = smov 0  }
   0x2   :  { %s806_s16 = smov 0  }
   0x3 LB: > { %s22_s17 = sadd.s32 1, %s765_s14  ;;  %s25_s18 = sadd.s32 1, %s769_s15  ;;  %s773_s16 = sphi %s806_s16, %s13_s16   ;;  %s769_s15 = sphi %s804_s15, %s962_s15   ;;  %s765_s14 = sphi %s802_s14, %s961_s14   ;;  %s761_s13 = sphi %s800_s13, %s960_s13   ;;  %s757_s12 = sphi %s798_s12, %s959_s12  }
   0x4   : > { %p23_p0 = scmp.ge.s32.totalorder %s22_s17, 2  ;;  %p544_p1 = scmp.ge.s32.totalorder %s773_s16, 1 }
   0x5   : > { %p151_p2 = scmp.lt.s32.totalorder %s773_s16, 5 }
   0x6   : > { %s964_s17 = smov (%p23_p0, %s22_s17), 0  ;;  %s966_s18 = smov (!%p23_p0, %s25_s18), %s769_s15 }
   0x7   : > { %p152_p3 = pnand %p544_p1, %p151_p2  ;;  %p27_p4 = scmp.ge.s32.totalorder %s966_s18, 2 }
   0x8   : > { %v549_v0 = vld [vmem:[%s956_s1 + $0x40] sm:$0xff] (!%p152_p3)  ;;  %v550_v1 = vld [vmem:[%s956_s1 + $0x48] sm:$0xff] (!%p152_p3)  ;;  %v775_v3 = vmov (!%p152_p3), 0.0|0.0   ;;  %v551_v6 = vld [vmem:[%s956_s1 + $0x50] sm:$0xff] (!%p152_p3)  ;;  %p178_p5 = scmp.lt.s32.totalorder (!%p152_p3), %s761_s13, 1  ;;  %vm776_vm0 = vmmov (!%p152_p3), 0  }
   0x9   : > { %s968_s18 = smov (%p27_p4, %s966_s18), 0  ;;  %155 = sbr.rel (%p152_p3) target bundleno = 260 (0x104), region = 32 }
   0xa   : > { %v195_v2 = vld [vmem:[%s956_s1] sm:$0xff] (!%p152_p3)  ;;  %655 = vmatprep.subr.bf16.mxu0 (!%p152_p3), %v775_v3  ;;  %v656_v4 = vpack.c.bf16 (!%p152_p3), %v550_v1, %v549_v0  ;;  %667 = vmatprep.subr.bf16.mxu1 (!%p152_p3), %v775_v3  ;;  %v196_v5 = vld [vmem:[%s956_s1 + $0x8] sm:$0xff] (!%p152_p3)  ;;  %v552_v7 = vld [vmem:[%s956_s1 + $0x58] sm:$0xff] (!%p152_p3)  ;;  %v777_v11 = vmov (!%p152_p3), 0.0   ;;  %s548_s24 = sshll.u32 (!%p152_p3), %s757_s12, 3  ;;  %vm214_vm1 = vcmask (!%p152_p3), 1045504  }
   0xb   : > { %v668_v8 = vpack.c.bf16 (!%p152_p3), %v196_v5, %v195_v2  ;;  %v197_v9 = vld [vmem:[%s956_s1 + $0x10] sm:$0xff] (!%p152_p3)  ;;  %v198_v10 = vld [vmem:[%s956_s1 + $0x18] sm:$0xff] (!%p152_p3)  ;;  %614 = vmatprep.mubr.msk.f32.mxu0 (!%p152_p3), %vm776_vm0, %v777_v11  ;;  %633 = vmatprep.mubr.msk.f32.mxu1 (!%p152_p3), %vm776_vm0, %v777_v11  ;;  %v659_v12 = vpack.c.bf16 (!%p152_p3), %v552_v7, %v551_v6  ;;  %v553_v14 = vld [vmem:[%s956_s1 + $0x60] sm:$0xff] (!%p152_p3)  ;;  %vm218_vm2 = vcmask (!%p152_p3), 523264   ;;  %vm372_vm3 = vcmask (!%p152_p3), 1043456   ;;  %p185_p6 = scmp.lt.s32.totalorder (!%p152_p3), %s757_s12, 1 }
   0xc   : > { %657 = vmatpush3.bf16.msra.mxu0 (!%p152_p3), %v656_v4  ;;  %v671_v13 = vpack.c.bf16 (!%p152_p3), %v198_v10, %v197_v9  ;;  %v554_v15 = vld [vmem:[%s956_s1 + $0x68] sm:$0xff] (!%p152_p3)  ;;  %v199_v16 = vld [vmem:[%s956_s1 + $0x20] sm:$0xff] (!%p152_p3)  ;;  %v555_v20 = vld [vmem:[%s956_s1 + $0x70] sm:$0xff] (!%p152_p3) }
   0xd   : > { %669 = vmatpush3.bf16.msra.mxu1 (!%p152_p3), %v668_v8  ;;  %658 = vmatprep.subr.bf16.mxu0 (!%p152_p3), %v775_v3  ;;  %v200_v17 = vld [vmem:[%s956_s1 + $0x28] sm:$0xff] (!%p152_p3)  ;;  %v662_v18 = vpack.c.bf16 (!%p152_p3), %v554_v15, %v553_v14  ;;  %v556_v21 = vld [vmem:[%s956_s1 + $0x78] sm:$0xff] (!%p152_p3)  ;;  %v201_v22 = vld [vmem:[%s956_s1 + $0x30] sm:$0xff] (!%p152_p3) }
   0xe   : > { %670 = vmatprep.subr.bf16.mxu1 (!%p152_p3), %v775_v3  ;;  %v674_v19 = vpack.c.bf16 (!%p152_p3), %v200_v17, %v199_v16  ;;  %v202_v23 = vld [vmem:[%s956_s1 + $0x38] sm:$0xff] (!%p152_p3)  ;;  %v665_v26 = vpack.c.bf16 (!%p152_p3), %v556_v21, %v555_v20  ;;  %v559_v30 = vld [vmem:[%s956_s1 + $0x80] sm:$0xff] (!%p152_p3)  ;;  %v560_v31 = vld [vmem:[%s956_s1 + $0x88] sm:$0xff] (!%p152_p3) }
   0xf   : > { %v677_v29 = vpack.c.bf16 (!%p152_p3), %v202_v23, %v201_v22  ;;  %v680_v33 = vpack.c.bf16 (!%p152_p3), %v560_v31, %v559_v30  ;;  %v561_v34 = vld [vmem:[%s956_s1 + $0x90] sm:$0xff] (!%p152_p3)  ;;  %v562_v35 = vld [vmem:[%s956_s1 + $0x98] sm:$0xff] (!%p152_p3)  ;;  %v563_v37 = vld [vmem:[%s956_s1 + $0xa0] sm:$0xff] (!%p152_p3) }
  0x10   : > { %s970_s13 = smov (!%p178_p5, %s761_s13), 1  ;;  %660 = vmatpush3.bf16.msra.mxu0 %v659_v12  ;;  %v683_v36 = vpack.c.bf16 %v562_v35, %v561_v34  ;;  %v564_v38 = vld [vmem:[%s956_s1 + $0xa8] sm:$0xff]  ;;  %v565_v40 = vld [vmem:[%s956_s1 + $0xb0] sm:$0xff]  ;;  %v566_v41 = vld [vmem:[%s956_s1 + $0xb8] sm:$0xff]  ;;  %s972_s12 = smov (!%p185_p6, %s757_s12), 1 }
  0x11   : > { %s691_s23 = smul.u32 24, %s970_s13  ;;  %672 = vmatpush3.bf16.msra.mxu1 %v671_v13  ;;  %661 = vmatprep.subr.bf16.mxu0 %v775_v3  ;;  %v686_v39 = vpack.c.bf16 %v564_v38, %v563_v37  ;;  %v689_v43 = vpack.c.bf16 %v566_v41, %v565_v40  ;;  %s546_s6 = sshll.u32 %s970_s13, 1  ;;  %v568_v52 = vld [vmem:[%s957_s2] ss:$0 sm:$0xff] }
  0x12   : > { %673 = vmatprep.subr.bf16.mxu1 %v775_v3 }
  0x13   : > { %s182_s27 = scalar_lea.vmem %s955_s0, %s691_s23 }
  0x14   : > { %s192_s7 = scalar_lea.vmem %s182_s27, %s548_s24  ;;  %663 = vmatpush3.bf16.msra.mxu0 %v662_v18 }
  0x15   : > { %v193_v24 = vld [vmem:[%s192_s7] sm:$0xff]  ;;  %v194_v25 = vld [vmem:[%s192_s7 + $0x8] sm:$0xff]  ;;  %675 = vmatpush3.bf16.msra.mxu1 %v674_v19  ;;  %664 = vmatprep.subr.bf16.mxu0 %v775_v3  ;;  %s188_s7 = sadd.s32 %s546_s6, %s972_s12 }
  0x16   : > { %v215_v27 = vrot.slane %v193_v24, 2  ;;  %v216_v28 = vrot.slane %v194_v25, 2  ;;  %676 = vmatprep.subr.bf16.mxu1 %v775_v3  ;;  %v374_v42 = vrot.slane %v194_v25, 4  ;;  %v373_v44 = vrot.slane %v193_v24, 4  ;;  %s547_s8 = sshll.u32 %s188_s7, 3 }
  0x17   : > { %s190_s20 = scalar_lea.vmem %s958_s3, %s547_s8 }
  0x18   : > { %666 = vmatpush3.bf16.msra.mxu0 %v665_v26  ;;  %v217_v32 = vsel %vm214_vm1, %v215_v27, %v216_v28  ;;  %v375_v45 = vsel %vm372_vm3, %v373_v44, %v374_v42 }
  0x19   : > { %678 = vmatpush3.bf16.msra.mxu1 %v677_v29  ;;  %679 = vmatprep.subr.bf16.mxu0 %v775_v3 }
  0x1b   : > { %615 = vmatmul.mubr.msk.f32.vlgmr.msra.gmra.mrb[0].mxu0 %vm218_vm2, %v217_v32 }
  0x1c   : > { %634 = vmatmul.mubr.msk.f32.vlgmr.msra.gmra.mrb[0].mxu1 %vm218_vm2, %v193_v24  ;;  %681 = vmatpush3.bf16.msra.mxu0 %v680_v33 }
  0x1d   : > { %682 = vmatprep.subr.bf16.mxu0 %v775_v3  ;;  %652 = vmatprep.mubr.msk.f32.mxu0 %vm776_vm0, %v777_v11 }
  0x20   : > { %684 = vmatpush3.bf16.msra.mxu0 %v683_v36 }
  0x21   : > { %685 = vmatprep.subr.bf16.mxu0 %v775_v3 }
  0x24   : > { %687 = vmatpush3.bf16.msra.mxu0 %v686_v39 }
  0x25   : > { %688 = vmatprep.subr.bf16.mxu0 %v775_v3 }
  0x28   : > { %690 = vmatpush3.bf16.msra.mxu0 %v689_v43 }
  0x2b   : > { %653 = vmatmul.mubr.msk.f32.vlgmr.msra.gmra.mrb[2].mxu0 %vm218_vm2, %v375_v45 }
  0xee   : > { %v287_v46 = vpop.f32.mrb[0].mxu0 }
  0xef   : > { %v616_v47 = vpop.f32.mrb[1].mxu0  ;;  %v359_v48 = vpop.f32.mrb[0].mxu1 }
  0xf0   : > { %v360_v49 = vadd.f32 %v359_v48, %v287_v46  ;;  %v635_v50 = vpop.f32.mrb[1].mxu1 }
  0xfe   : > { %v444_v51 = vpop.f32.mrb[2].mxu0 }
  0xff   : > { %v448_v53 = vadd.f32 %v444_v51, %v360_v49  ;;  %v654_v54 = vpop.f32.mrb[3].mxu0 }
 0x101   : > { %v456_v55 = vadd.f32 %v568_v52, %v448_v53 }
 0x103   : > { %457 = vst [vmem:[%s190_s20] sm:$0xff] %v456_v55 }
 0x104 PF: > { %s13_s16 = sadd.s32 1, %s773_s16   ;;  %s959_s12 = smov %s765_s14 }
 0x105   : > { %p10_p7 = scmp.ge.s32.totalorder %s13_s16, 6   ;;  %s960_s13 = smov %s769_s15 }
 0x106   : > { %s961_s14 = smov %s964_s17  ;;  %s962_s15 = smov %s968_s18 }
 0x107   :  { %12 = sbr.rel (!%p10_p7) target bundleno = 3 (0x3), region = 65 }

</bundles_post_ra>
